<compile_context>
chip_gen: v7x
topology: tpu7x:2x2x1
jax: 0.10.0
libtpu: 0.0.40
codegen_flags: <defaults>
</compile_context>

<pallas_src>
import functools

import jax
import jax.numpy as jnp
from jax.experimental import pallas as pl
from jax.experimental.pallas import tpu as pltpu

_IN_FEATURES = 784
_NUM_CLASSES = 10
_PADDED_CLASSES = 128      # lane-dense logits / MXU-shaped N
_NEG_INF = -1e30


def _round_up(x, m):
    return ((x + m - 1) // m) * m


def prepare_params(w, b):
    """One-time param prep (hoisted out of the per-call path).

    w: (10, 784) f32 (PyTorch nn.Linear layout), b: (10,) f32.
    Returns (w_pad, b_pad) with w_pad (784, 128) zero-padded and
    b_pad (1, 128) with -1e30 in the padded class columns.
    """
    w_t = jnp.transpose(jnp.asarray(w, jnp.float32))                 # (784, 10)
    w_pad = jnp.zeros((_IN_FEATURES, _PADDED_CLASSES), jnp.float32)
    w_pad = w_pad.at[:, :_NUM_CLASSES].set(w_t)
    b_pad = jnp.full((1, _PADDED_CLASSES), _NEG_INF, jnp.float32)
    b_pad = b_pad.at[0, :_NUM_CLASSES].set(jnp.asarray(b, jnp.float32))
    return w_pad, b_pad


# ---------------------------------------------------------------------------
# Kernels
# ---------------------------------------------------------------------------
def _linear_kernel(x_ref, w_ref, b_ref, logits_ref):
    # Inference-only path: no loss epilogue at all.
    x = x_ref[...].astype(jnp.float32)          # upcast in-kernel (uint8/bf16 ok)
    logits_ref[...] = (
        jnp.dot(x, w_ref[...], preferred_element_type=jnp.float32) + b_ref[...]
    )


def _linear_loss_kernel(x_ref, w_ref, b_ref, y_ref, logits_ref, loss_ref):
    x = x_ref[...].astype(jnp.float32)          # upcast in-kernel (uint8/bf16 ok)
    logits = jnp.dot(x, w_ref[...], preferred_element_type=jnp.float32) + b_ref[...]
    logits_ref[...] = logits

    # Per-row CrossEntropy contribution: logsumexp(logits) - logits[label].
    # Padded class columns carry bias = -1e30, so exp(pad - m) == 0 and the
    # max ignores them; only real classes participate.
    labels = y_ref[...]                                             # (TB, 1) i32
    m = jnp.max(logits, axis=-1, keepdims=True)                     # (TB, 1)
    lse = m + jnp.log(jnp.sum(jnp.exp(logits - m), axis=-1, keepdims=True))
    cls = jax.lax.broadcasted_iota(jnp.int32, logits.shape, 1)
    picked = jnp.sum(jnp.where(cls == labels, logits, 0.0),
                     axis=-1, keepdims=True)                        # (TB, 1)
    loss_ref[...] = lse - picked                                    # per-row partials


# ---------------------------------------------------------------------------
# pallas_call wrappers (jitted; tile size is static)
# ---------------------------------------------------------------------------
@functools.partial(jax.jit, static_argnames=("tb",))
def _forward_infer(x, w_pad, b_pad, *, tb):
    B = x.shape[0]
    bp = _round_up(B, tb)
    if bp != B:
        x = jnp.pad(x, ((0, bp - B), (0, 0)))

    logits = pl.pallas_call(
        _linear_kernel,
        out_shape=jax.ShapeDtypeStruct((bp, _PADDED_CLASSES), jnp.float32),
        grid=(bp // tb,),
        in_specs=[
            pl.BlockSpec((tb, _IN_FEATURES), lambda i: (i, 0)),
            pl.BlockSpec((_IN_FEATURES, _PADDED_CLASSES), lambda i: (0, 0)),
            pl.BlockSpec((1, _PADDED_CLASSES), lambda i: (0, 0)),
        ],
        out_specs=pl.BlockSpec((tb, _PADDED_CLASSES), lambda i: (i, 0)),
        compiler_params=pltpu.CompilerParams(
            dimension_semantics=("parallel",)),
    )(x, w_pad, b_pad)
    return logits[:B, :_NUM_CLASSES]


@functools.partial(jax.jit, static_argnames=("tb",))
def _forward_loss(x, labels2d, w_pad, b_pad, *, tb):
    B = x.shape[0]
    bp = _round_up(B, tb)
    if bp != B:
        x = jnp.pad(x, ((0, bp - B), (0, 0)))
        labels2d = jnp.pad(labels2d, ((0, bp - B), (0, 0)))

    logits, loss_rows = pl.pallas_call(
        _linear_loss_kernel,
        out_shape=(
            jax.ShapeDtypeStruct((bp, _PADDED_CLASSES), jnp.float32),
            jax.ShapeDtypeStruct((bp, 1), jnp.float32),
        ),
        grid=(bp // tb,),
        in_specs=[
            pl.BlockSpec((tb, _IN_FEATURES), lambda i: (i, 0)),
            pl.BlockSpec((_IN_FEATURES, _PADDED_CLASSES), lambda i: (0, 0)),
            pl.BlockSpec((1, _PADDED_CLASSES), lambda i: (0, 0)),
            pl.BlockSpec((tb, 1), lambda i: (i, 0)),
        ],
        out_specs=(
            pl.BlockSpec((tb, _PADDED_CLASSES), lambda i: (i, 0)),
            pl.BlockSpec((tb, 1), lambda i: (i, 0)),
        ),
        compiler_params=pltpu.CompilerParams(
            dimension_semantics=("parallel",)),
    )(x, w_pad, b_pad, labels2d)

    # Padded batch rows are sliced off before the sum (masking for ragged B).
    loss = jnp.sum(loss_rows[:B, 0])
    return logits[:B, :_NUM_CLASSES], loss


def mnist_forward(img, label, w_pad, b_pad, *, tile_rows=512):
    """img: (B, 1, 28, 28) float/uint8 (NCHW). label: (B,) int or None.
       w_pad/b_pad: outputs of prepare_params. Returns (logits (B,10), loss|None)."""
    B = img.shape[0]
    x = img.reshape(B, _IN_FEATURES)          # keep source dtype; kernel upcasts
    tb = min(tile_rows, _round_up(B, 8))      # multiple of 8, capped at tile_rows
    if label is None:
        return _forward_infer(x, w_pad, b_pad, tb=tb), None
    labels2d = jnp.asarray(label, jnp.int32).reshape(B, 1)
    return _forward_loss(x, labels2d, w_pad, b_pad, tb=tb)


# ---------------------------------------------------------------------------
# Self-test
# ---------------------------------------------------------------------------
if __name__ == "__main__":
    key = jax.random.PRNGKey(0)
    k_img, k_w, k_b, k_lbl = jax.random.split(key, 4)

    B = 8
    img = jax.random.normal(k_img, (B, 1, 28, 28), dtype=jnp.float32)
    label = jax.random.randint(k_lbl, (B,), 0, 10, dtype=jnp.int32)

    # Deterministic nn.Linear-style init: U(-1/sqrt(784), 1/sqrt(784))
    bound = 1.0 / jnp.sqrt(784.0)
    w = jax.random.uniform(k_w, (10, 784), jnp.float32, -bound, bound)
    b = jax.random.uniform(k_b, (10,), jnp.float32, -bound, bound)

    w_pad, b_pad = prepare_params(w, b)       # one-time transpose + lane padding

    # Training path (logits + summed cross-entropy loss)
    logits, loss = mnist_forward(img, label, w_pad, b_pad)
    jax.block_until_ready((logits, loss))

    # Pure-JAX reference check
    x = img.reshape(B, 784)
    ref_logits = x @ w.T + b
    ref_loss = jnp.sum(
        jax.nn.logsumexp(ref_logits, axis=-1)
        - jnp.take_along_axis(ref_logits, label[:, None], axis=-1)[:, 0]
    )
    assert logits.shape == (B, 10)
    assert jnp.allclose(logits, ref_logits, atol=1e-4, rtol=1e-4)
    assert jnp.allclose(loss, ref_loss, atol=1e-3, rtol=1e-4)

    # No-label path: loss is None and the loss epilogue is never executed.
    logits_only, loss_none = mnist_forward(img, None, w_pad, b_pad)
    jax.block_until_ready(logits_only)
    assert loss_none is None
    assert jnp.allclose(logits_only, ref_logits, atol=1e-4, rtol=1e-4)

    # Ragged batch (B not a multiple of the tile) exercises pad + slice masking.
    B2 = 13
    img2 = jax.random.normal(k_img, (B2, 1, 28, 28), dtype=jnp.float32)
    label2 = jax.random.randint(k_lbl, (B2,), 0, 10, dtype=jnp.int32)
    logits2, loss2 = mnist_forward(img2, label2, w_pad, b_pad, tile_rows=8)
    jax.block_until_ready((logits2, loss2))
    x2 = img2.reshape(B2, 784)
    ref_logits2 = x2 @ w.T + b
    ref_loss2 = jnp.sum(
        jax.nn.logsumexp(ref_logits2, axis=-1)
        - jnp.take_along_axis(ref_logits2, label2[:, None], axis=-1)[:, 0]
    )
    assert jnp.allclose(logits2, ref_logits2, atol=1e-4, rtol=1e-4)
    assert jnp.allclose(loss2, ref_loss2, atol=1e-3, rtol=1e-4)

    print("KERNEL_OK")
</pallas_src>

<mosaic_0001>
module attributes {stable_mosaic.version = 11 : i64} {
  func.func @_linear_loss_kernel(%arg0: i32, %arg1: memref<8x784xf32, #tpu.memory_space<vmem>>, %arg2: memref<784x128xf32, #tpu.memory_space<vmem>>, %arg3: memref<1x128xf32, #tpu.memory_space<vmem>>, %arg4: memref<8x1xi32, #tpu.memory_space<vmem>>, %arg5: memref<8x128xf32, #tpu.memory_space<vmem>>, %arg6: memref<8x1xf32, #tpu.memory_space<vmem>>) attributes {dimension_semantics = [#tpu.dimension_semantics<parallel>], iteration_bounds = array<i64: 1>, scalar_prefetch = 0 : i64, scratch_operands = 0 : i64, tpu.core_type = #tpu.core_type<tc>, window_params = [{transform_indices = @transform_0, window_bounds = array<i64: 8, 784>}, {pipeline_mode = #tpu.pipeline_mode<synchronous>, transform_indices = @transform_1, window_bounds = array<i64: 784, 128>}, {pipeline_mode = #tpu.pipeline_mode<synchronous>, transform_indices = @transform_2, window_bounds = array<i64: 1, 128>}, {transform_indices = @transform_3, window_bounds = array<i64: 8, 1>}, {transform_indices = @transform_4, window_bounds = array<i64: 8, 128>}, {transform_indices = @transform_5, window_bounds = array<i64: 8, 1>}]} {
    %c0 = arith.constant 0 : index
    %c0_0 = arith.constant 0 : index
    %0 = vector.load %arg1[%c0, %c0_0] : memref<8x784xf32, #tpu.memory_space<vmem>>, vector<8x784xf32>
    %c0_1 = arith.constant 0 : index
    %c0_2 = arith.constant 0 : index
    %1 = vector.load %arg2[%c0_1, %c0_2] : memref<784x128xf32, #tpu.memory_space<vmem>>, vector<784x128xf32>
    %cst = arith.constant dense<0.000000e+00> : vector<8x128xf32>
    %2 = tpu.matmul %0, %1, %cst {dimension_numbers = #tpu.dot_dimension_numbers<[1], [0], [0], [1], [0, 0, 1, 1], [], []>} : vector<8x784xf32>, vector<784x128xf32>, vector<8x128xf32> -> vector<8x128xf32>
    %c0_3 = arith.constant 0 : index
    %c0_4 = arith.constant 0 : index
    %3 = vector.load %arg3[%c0_3, %c0_4] : memref<1x128xf32, #tpu.memory_space<vmem>>, vector<1x128xf32>
    %4 = vector.broadcast %3 : vector<1x128xf32> to vector<8x128xf32>
    %5 = arith.addf %2, %4 : vector<8x128xf32>
    %c0_5 = arith.constant 0 : index
    %c0_6 = arith.constant 0 : index
    %6 = vector.load %arg5[%c0_5, %c0_6] : memref<8x128xf32, #tpu.memory_space<vmem>>, vector<8x128xf32>
    tpu.vector_store %arg5[%c0_5, %c0_6], %5 {strides = array<i32>} : memref<8x128xf32, #tpu.memory_space<vmem>>, vector<8x128xf32>,
    %c0_7 = arith.constant 0 : index
    %c0_8 = arith.constant 0 : index
    %7 = vector.load %arg4[%c0_7, %c0_8] : memref<8x1xi32, #tpu.memory_space<vmem>>, vector<8x1xi32>
    %cst_9 = arith.constant dense<0xFF800000> : vector<8xf32>
    %8 = vector.multi_reduction <maximumf>, %5, %cst_9 [1] : vector<8x128xf32> to vector<8xf32>
    %9 = vector.shape_cast %8 : vector<8xf32> to vector<8x1xf32>
    %10 = vector.broadcast %9 : vector<8x1xf32> to vector<8x128xf32>
    %11 = arith.subf %5, %10 : vector<8x128xf32>
    %12 = math.exp %11 : vector<8x128xf32>
    %cst_10 = arith.constant dense<0.000000e+00> : vector<8xf32>
    %13 = vector.multi_reduction <add>, %12, %cst_10 [1] : vector<8x128xf32> to vector<8xf32>
    %14 = vector.shape_cast %13 : vector<8xf32> to vector<8x1xf32>
    %15 = math.log %14 : vector<8x1xf32>
    %16 = arith.addf %9, %15 : vector<8x1xf32>
    %17 = tpu.iota {dimensions = array<i32: 1>} : vector<8x128xi32>
    %18 = vector.broadcast %7 : vector<8x1xi32> to vector<8x128xi32>
    %19 = arith.cmpi eq, %17, %18 : vector<8x128xi32>
    %cst_11 = arith.constant 0.000000e+00 : f32
    %20 = vector.broadcast %cst_11 : f32 to vector<8x128xf32>
    %21 = arith.select %19, %5, %20 : vector<8x128xi1>, vector<8x128xf32>
    %cst_12 = arith.constant dense<0.000000e+00> : vector<8xf32>
    %22 = vector.multi_reduction <add>, %21, %cst_12 [1] : vector<8x128xf32> to vector<8xf32>
    %23 = vector.shape_cast %22 : vector<8xf32> to vector<8x1xf32>
    %24 = arith.subf %16, %23 : vector<8x1xf32>
    %c0_13 = arith.constant 0 : index
    %c0_14 = arith.constant 0 : index
    %25 = vector.load %arg6[%c0_13, %c0_14] : memref<8x1xf32, #tpu.memory_space<vmem>>, vector<8x1xf32>
    tpu.vector_store %arg6[%c0_13, %c0_14], %24 {strides = array<i32>} : memref<8x1xf32, #tpu.memory_space<vmem>>, vector<8x1xf32>,
    return
  }
  func.func @transform_0(%arg0: i32) -> (i32, i32) {
    %c0_i32 = arith.constant 0 : i32
    %c0_i32_0 = arith.constant 0 : i32
    return %arg0, %c0_i32 : i32, i32
  }
  func.func @transform_1(%arg0: i32) -> (i32, i32) {
    %c0_i32 = arith.constant 0 : i32
    %c0_i32_0 = arith.constant 0 : i32
    %c0_i32_1 = arith.constant 0 : i32
    return %c0_i32, %c0_i32_0 : i32, i32
  }
  func.func @transform_2(%arg0: i32) -> (i32, i32) {
    %c0_i32 = arith.constant 0 : i32
    %c0_i32_0 = arith.constant 0 : i32
    %c0_i32_1 = arith.constant 0 : i32
    return %c0_i32, %c0_i32_0 : i32, i32
  }
  func.func @transform_3(%arg0: i32) -> (i32, i32) {
    %c0_i32 = arith.constant 0 : i32
    %c0_i32_0 = arith.constant 0 : i32
    return %arg0, %c0_i32 : i32, i32
  }
  func.func @transform_4(%arg0: i32) -> (i32, i32) {
    %c0_i32 = arith.constant 0 : i32
    %c0_i32_0 = arith.constant 0 : i32
    return %arg0, %c0_i32 : i32, i32
  }
  func.func @transform_5(%arg0: i32) -> (i32, i32) {
    %c0_i32 = arith.constant 0 : i32
    %c0_i32_0 = arith.constant 0 : i32
    return %arg0, %c0_i32 : i32, i32
  }
}

</mosaic_0001>

<bundles_post_ra>
// kernel: _forward_loss.1
= control target key start
LH: loop header
LB: loop body
LE: loop exit
PB: predicated region body
PF: predicated region fallthrough
CT: control target
= control target key end

     0   :  { %11 = vsyncpa [#allocation3], 0  ;;  %s879_s0 = inlined_call_operand.hbm [shape: f32[8,784], index: 0, kind: input, shape index: {}]   ;;  %s880_s1 = inlined_call_operand.hbm [shape: f32[784,128], index: 1, kind: input, shape index: {}]   ;;  %s881_s2 = inlined_call_operand.vmem [shape: f32[1,128], index: 2, kind: input, shape index: {}]   ;;  %s882_s3 = inlined_call_operand.vmem [shape: s32[8,1], index: 3, kind: input, shape index: {}]   ;;  %s883_s4 = inlined_call_operand.hbm [shape: f32[8,128], index: 4, kind: output, shape index: {0}]   ;;  %s884_s5 = inlined_call_operand.vmem [shape: f32[8,1], index: 5, kind: output, shape index: {1}]  }
   0x1   :  { %12 = vsyncpa [#allocation6], 0 }
   0x2   :  { %13 = vsyncpa [#allocation4], 0  ;;  %s788_s18 = smov [#allocation2]   ;;  %s789_s20 = smov [#allocation5]  }
   0x3   :  { %s20_s19 = sshll.u32 %s788_s18, 4  ;;  %s29_s21 = sshll.u32 %s789_s20, 4  ;;  %s21_s19 = int_to_ptr.vmem [resolvable:$true] %s20_s19  ;;  %s827_s21 = int_to_ptr.vmem [resolvable:$true] %s29_s21 }
   0x4   :  { %s716_s24 = scalar_lea.hbm %s879_s0, 896 }
   0x5   :  { %p717_p0 = scmp.ne.s32.totalorder %s879_s0, %s716_s24  ;;  %p720_p1 = scmp.lt.u32.totalorder %s716_s24, %s879_s0 }
   0x7   :  { %p722_p2 = pnand %p720_p1, %p717_p0 }
   0x9   :  { %725 = shalt.err (!%p722_p2)
}
   0xa   :  { %s726_s29 = scalar_lea.vmem %s21_s19, 896  ;;  %p731_p4 = scmp.lt.s32.totalorder %s21_s19, %s21_s19 }
   0xb   :  { %p727_p3 = scmp.ne.s32.totalorder %s21_s19, %s726_s29  ;;  %p732_p5 = scmp.lt.s32.totalorder %s726_s29, %s726_s29 }
   0xd   :  { %p733_p6 = por %p732_p5, %p731_p4 }
   0xf   :  { %p734_p7 = pnand %p733_p6, %p727_p3 }
  0x11   :  { %737 = shalt.err (!%p734_p7)
}
  0x12   :  { %23 = dma.hbm_to_vmem [thread:$0]  %s879_s0, 896, %s21_s19, [#allocation3]  }
  0x13   :  { %s738_s9 = scalar_lea.hbm %s880_s1, 12544 }
  0x14   :  { %p739_p8 = scmp.ne.s32.totalorder %s880_s1, %s738_s9  ;;  %p742_p9 = scmp.lt.u32.totalorder %s738_s9, %s880_s1 }
  0x16   :  { %p744_p10 = pnand %p742_p9, %p739_p8 }
  0x18   :  { %747 = shalt.err (!%p744_p10)
}
  0x19   :  { %s748_s14 = scalar_lea.vmem %s827_s21, 12544  ;;  %p753_p12 = scmp.lt.s32.totalorder %s827_s21, %s827_s21 }
  0x1a   :  { %p749_p11 = scmp.ne.s32.totalorder %s827_s21, %s748_s14  ;;  %p754_p13 = scmp.lt.s32.totalorder %s748_s14, %s748_s14 }
  0x1c   :  { %p755_p0 = por %p754_p13, %p753_p12 }
  0x1e   :  { %p756_p1 = pnand %p755_p0, %p749_p11 }
  0x20   :  { %759 = shalt.err (!%p756_p1)
}
  0x21   :  { %s790_s0 = smov 128   ;;  %s791_s15 = smov 8  }
  0x22   :  { %35 = dma.hbm_to_vmem [thread:$0]  %s880_s1, 12544, %s827_s21, [#allocation6], %s790_s0, %s790_s0, %s791_s15  }
  0x23   :  { %782 = dma.done.wait [#allocation3], 896  }
  0x24   :  { %783 = vsyncadd [#allocation3], 4294966400 }
  0x25   :  { %784 = dma.done.wait [#allocation6], 12544  }
  0x26   :  { %785 = vsyncadd [#allocation6], 4294954752  ;;  %v69_v0 = vld [vmem:[#allocation5 + $0x80] sm:$0xff]  ;;  %v70_v1 = vld [vmem:[#allocation5 + $0x88] sm:$0xff]  ;;  %vm793_vm0 = vmmov 0   ;;  %vm158_vm1 = vcmask 130048  }
  0x27   :  { %v53_v2 = vld [vmem:[#allocation5] sm:$0xff]  ;;  %v603_v3 = vpack.c.bf16 %v70_v1, %v69_v0  ;;  %v54_v4 = vld [vmem:[#allocation5 + $0x8] sm:$0xff]  ;;  %v71_v11 = vld [vmem:[#allocation5 + $0x90] sm:$0xff] }
  0x28   :  { %v101_v5 = vld [vmem:[#allocation5 + $0x180] sm:$0xff]  ;;  %v102_v6 = vld [vmem:[#allocation5 + $0x188] sm:$0xff]  ;;  %v605_v7 = vpack.c.bf16 %v54_v4, %v53_v2  ;;  %v72_v13 = vld [vmem:[#allocation5 + $0x98] sm:$0xff] }
  0x29   :  { %v635_v8 = vpack.c.bf16 %v102_v6, %v101_v5  ;;  %v85_v9 = vld [vmem:[#allocation5 + $0x100] sm:$0xff]  ;;  %v86_v10 = vld [vmem:[#allocation5 + $0x108] sm:$0xff]  ;;  %604 = vmatprep.subr.bf16.mxu0 %v603_v3  ;;  %v55_v14 = vld [vmem:[#allocation5 + $0x10] sm:$0xff]  ;;  %v607_v16 = vpack.c.bf16 %v72_v13, %v71_v11 }
  0x2a   :  { %v637_v12 = vpack.c.bf16 %v86_v10, %v85_v9  ;;  %v56_v15 = vld [vmem:[#allocation5 + $0x18] sm:$0xff]  ;;  %606 = vmatpush3.bf16.msra.mxu0 %v605_v7  ;;  %v103_v18 = vld [vmem:[#allocation5 + $0x190] sm:$0xff]  ;;  %v73_v23 = vld [vmem:[#allocation5 + $0xa0] sm:$0xff] }
  0x2b   :  { %636 = vmatprep.subr.bf16.mxu1 %v635_v8  ;;  %v609_v17 = vpack.c.bf16 %v56_v15, %v55_v14  ;;  %v104_v19 = vld [vmem:[#allocation5 + $0x198] sm:$0xff]  ;;  %v87_v20 = vld [vmem:[#allocation5 + $0x110] sm:$0xff]  ;;  %v74_v24 = vld [vmem:[#allocation5 + $0xa8] sm:$0xff]  ;;  %608 = vmatprep.subr.bf16.mxu0 %v607_v16 }
  0x2c   :  { %638 = vmatpush3.bf16.msra.mxu1 %v637_v12  ;;  %v639_v21 = vpack.c.bf16 %v104_v19, %v103_v18  ;;  %v88_v22 = vld [vmem:[#allocation5 + $0x118] sm:$0xff]  ;;  %v611_v26 = vpack.c.bf16 %v74_v24, %v73_v23  ;;  %v57_v27 = vld [vmem:[#allocation5 + $0x20] sm:$0xff]  ;;  %v58_v28 = vld [vmem:[#allocation5 + $0x28] sm:$0xff] }
  0x2d   :  { %v641_v25 = vpack.c.bf16 %v88_v22, %v87_v20  ;;  %v105_v29 = vld [vmem:[#allocation5 + $0x1a0] sm:$0xff]  ;;  %v106_v30 = vld [vmem:[#allocation5 + $0x1a8] sm:$0xff]  ;;  %v613_v33 = vpack.c.bf16 %v58_v28, %v57_v27  ;;  %v75_v35 = vld [vmem:[#allocation5 + $0xb0] sm:$0xff] }
  0x2e   :  { %640 = vmatprep.subr.bf16.mxu1 %v639_v21  ;;  %v89_v31 = vld [vmem:[#allocation5 + $0x120] sm:$0xff]  ;;  %v90_v32 = vld [vmem:[#allocation5 + $0x128] sm:$0xff]  ;;  %610 = vmatpush3.bf16.msra.mxu0 %v609_v17  ;;  %v643_v34 = vpack.c.bf16 %v106_v30, %v105_v29  ;;  %v76_v36 = vld [vmem:[#allocation5 + $0xb8] sm:$0xff] }
  0x2f   :  { %v59_v37 = vld [vmem:[#allocation5 + $0x30] sm:$0xff]  ;;  %612 = vmatprep.subr.bf16.mxu0 %v611_v26  ;;  %v645_v38 = vpack.c.bf16 %v90_v32, %v89_v31  ;;  %v615_v39 = vpack.c.bf16 %v76_v36, %v75_v35  ;;  %v60_v40 = vld [vmem:[#allocation5 + $0x38] sm:$0xff]  ;;  %v77_v46 = vld [vmem:[#allocation5 + $0xc0] sm:$0xff] }
  0x30   :  { %642 = vmatpush3.bf16.msra.mxu1 %v641_v25  ;;  %v107_v41 = vld [vmem:[#allocation5 + $0x1b0] sm:$0xff]  ;;  %v108_v42 = vld [vmem:[#allocation5 + $0x1b8] sm:$0xff]  ;;  %v78_v47 = vld [vmem:[#allocation5 + $0xc8] sm:$0xff]  ;;  %v617_v48 = vpack.c.bf16 %v60_v40, %v59_v37 }
  0x31   :  { %644 = vmatprep.subr.bf16.mxu1 %v643_v34  ;;  %v647_v43 = vpack.c.bf16 %v108_v42, %v107_v41  ;;  %v91_v44 = vld [vmem:[#allocation5 + $0x130] sm:$0xff]  ;;  %v92_v45 = vld [vmem:[#allocation5 + $0x138] sm:$0xff]  ;;  %v109_v49 = vld [vmem:[#allocation5 + $0x1c0] sm:$0xff]  ;;  %v619_v52 = vpack.c.bf16 %v78_v47, %v77_v46 }
  0x32   :  { %614 = vmatpush3.bf16.msra.mxu0 %v613_v33  ;;  %v110_v50 = vld [vmem:[#allocation5 + $0x1c8] sm:$0xff]  ;;  %v649_v51 = vpack.c.bf16 %v92_v45, %v91_v44  ;;  %v61_v53 = vld [vmem:[#allocation5 + $0x40] sm:$0xff]  ;;  %v79_v58 = vld [vmem:[#allocation5 + $0xd0] sm:$0xff] }
  0x33   :  { %616 = vmatprep.subr.bf16.mxu0 %v615_v39  ;;  %v62_v54 = vld [vmem:[#allocation5 + $0x48] sm:$0xff]  ;;  %v93_v55 = vld [vmem:[#allocation5 + $0x140] sm:$0xff]  ;;  %v651_v56 = vpack.c.bf16 %v110_v50, %v109_v49  ;;  %v80_v59 = vld [vmem:[#allocation5 + $0xd8] sm:$0xff]  ;;  %v792_v50 = vmov 0.0|0.0  }
  0x34   :  { %646 = vmatpush3.bf16.msra.mxu1 %v645_v38  ;;  %v94_v57 = vld [vmem:[#allocation5 + $0x148] sm:$0xff]  ;;  %v111_v60 = vld [vmem:[#allocation5 + $0x1d0] sm:$0xff]  ;;  %v112_v61 = vld [vmem:[#allocation5 + $0x1d8] sm:$0xff]  ;;  %v621_v62 = vpack.c.bf16 %v62_v54, %v61_v53  ;;  %v623_v0 = vpack.c.bf16 %v80_v59, %v79_v58 }
  0x35   :  { %648 = vmatprep.subr.bf16.mxu1 %v647_v43  ;;  %v653_v63 = vpack.c.bf16 %v94_v57, %v93_v55  ;;  %v63_v1 = vld [vmem:[#allocation5 + $0x50] sm:$0xff]  ;;  %v64_v2 = vld [vmem:[#allocation5 + $0x58] sm:$0xff]  ;;  %v655_v4 = vpack.c.bf16 %v112_v61, %v111_v60  ;;  %v81_v6 = vld [vmem:[#allocation5 + $0xe0] sm:$0xff]  ;;  %v794_v60 = vmov 0.0  }
  0x36   :  { %618 = vmatpush3.bf16.msra.mxu0 %v617_v48  ;;  %v95_v3 = vld [vmem:[#allocation5 + $0x150] sm:$0xff]  ;;  %v96_v5 = vld [vmem:[#allocation5 + $0x158] sm:$0xff]  ;;  %v82_v7 = vld [vmem:[#allocation5 + $0xe8] sm:$0xff]  ;;  %v625_v10 = vpack.c.bf16 %v64_v2, %v63_v1 }
  0x37   :  { %620 = vmatprep.subr.bf16.mxu0 %v619_v52  ;;  %v113_v8 = vld [vmem:[#allocation5 + $0x1e0] sm:$0xff]  ;;  %v114_v9 = vld [vmem:[#allocation5 + $0x1e8] sm:$0xff]  ;;  %v47_v12 = vld [vmem:[#allocation2 + $0x8] sm:$0xff]  ;;  %v657_v13 = vpack.c.bf16 %v96_v5, %v95_v3  ;;  %v627_v14 = vpack.c.bf16 %v82_v7, %v81_v6 }
  0x38   :  { %650 = vmatpush3.bf16.msra.mxu1 %v649_v51  ;;  %v65_v11 = vld [vmem:[#allocation5 + $0x60] sm:$0xff]  ;;  %v66_v15 = vld [vmem:[#allocation5 + $0x68] sm:$0xff]  ;;  %v659_v18 = vpack.c.bf16 %v114_v9, %v113_v8  ;;  %v83_v19 = vld [vmem:[#allocation5 + $0xf0] sm:$0xff]  ;;  %226 = vmatprep.mubr.f32.mxu0 %v47_v12 }
  0x39   :  { %652 = vmatprep.subr.bf16.mxu1 %v651_v56  ;;  %v97_v16 = vld [vmem:[#allocation5 + $0x160] sm:$0xff]  ;;  %v98_v17 = vld [vmem:[#allocation5 + $0x168] sm:$0xff]  ;;  %v84_v20 = vld [vmem:[#allocation5 + $0xf8] sm:$0xff]  ;;  %v629_v24 = vpack.c.bf16 %v66_v15, %v65_v11 }
  0x3a   :  { %622 = vmatpush3.bf16.msra.mxu0 %v621_v62  ;;  %v49_v21 = vld [vmem:[#allocation2 + $0x18] sm:$0xff]  ;;  %v115_v22 = vld [vmem:[#allocation5 + $0x1f0] sm:$0xff]  ;;  %v116_v23 = vld [vmem:[#allocation5 + $0x1f8] sm:$0xff]  ;;  %v661_v25 = vpack.c.bf16 %v98_v17, %v97_v16  ;;  %v631_v26 = vpack.c.bf16 %v84_v20, %v83_v19 }
  0x3b   :  { %624 = vmatprep.subr.bf16.mxu0 %v623_v0  ;;  %296 = vmatprep.mubr.f32.mxu1 %v49_v21  ;;  %v67_v27 = vld [vmem:[#allocation5 + $0x70] sm:$0xff]  ;;  %v68_v28 = vld [vmem:[#allocation5 + $0x78] sm:$0xff]  ;;  %v663_v30 = vpack.c.bf16 %v116_v23, %v115_v22  ;;  %v133_v32 = vld [vmem:[#allocation5 + $0x280] sm:$0xff] }
  0x3c   :  { %654 = vmatpush3.bf16.msra.mxu1 %v653_v63  ;;  %v99_v29 = vld [vmem:[#allocation5 + $0x170] sm:$0xff]  ;;  %v100_v31 = vld [vmem:[#allocation5 + $0x178] sm:$0xff]  ;;  %v134_v33 = vld [vmem:[#allocation5 + $0x288] sm:$0xff]  ;;  %v633_v34 = vpack.c.bf16 %v68_v28, %v67_v27  ;;  %v795_v28 = vmov 0  }
  0x3d   :  { %656 = vmatprep.subr.bf16.mxu1 %v655_v4  ;;  %v665_v35 = vpack.c.bf16 %v100_v31, %v99_v29  ;;  %v667_v36 = vpack.c.bf16 %v134_v33, %v133_v32  ;;  %v117_v37 = vld [vmem:[#allocation5 + $0x200] sm:$0xff]  ;;  %v118_v38 = vld [vmem:[#allocation5 + $0x208] sm:$0xff]  ;;  %v135_v39 = vld [vmem:[#allocation5 + $0x290] sm:$0xff]  ;;  %711 = vset.pattern.permute.xlu0 %v795_v28 }
  0x3e   :  { %626 = vmatpush3.bf16.msra.mxu0 %v625_v10  ;;  %v136_v40 = vld [vmem:[#allocation5 + $0x298] sm:$0xff]  ;;  %v46_v41 = vld [vmem:[#allocation2] sm:$0xff]  ;;  %v669_v42 = vpack.c.bf16 %v118_v38, %v117_v37  ;;  %v119_v44 = vld [vmem:[#allocation5 + $0x210] sm:$0xff] }
  0x3f   :  { %628 = vmatprep.subr.bf16.mxu0 %v627_v14  ;;  %v48_v43 = vld [vmem:[#allocation2 + $0x10] sm:$0xff]  ;;  %v671_v45 = vpack.c.bf16 %v136_v40, %v135_v39  ;;  %v137_v47 = vld [vmem:[#allocation5 + $0x2a0] sm:$0xff]  ;;  %v138_v48 = vld [vmem:[#allocation5 + $0x2a8] sm:$0xff] }
  0x40   :  { %658 = vmatpush3.bf16.msra.mxu1 %v657_v13  ;;  %v120_v46 = vld [vmem:[#allocation5 + $0x218] sm:$0xff]  ;;  %v51_v49 = vld [vmem:[#allocation2 + $0x28] sm:$0xff]  ;;  %v149_v51 = vld [vmem:[#allocation5 + $0x300] sm:$0xff]  ;;  %v675_v55 = vpack.c.bf16 %v138_v48, %v137_v47 }
  0x41   :  { %660 = vmatprep.subr.bf16.mxu1 %v659_v18  ;;  %v150_v52 = vld [vmem:[#allocation5 + $0x308] sm:$0xff]  ;;  %v673_v54 = vpack.c.bf16 %v120_v46, %v119_v44  ;;  %v121_v56 = vld [vmem:[#allocation5 + $0x220] sm:$0xff]  ;;  %v139_v58 = vld [vmem:[#allocation5 + $0x2b0] sm:$0xff] }
  0x42   :  { %630 = vmatpush3.bf16.msra.mxu0 %v629_v24  ;;  %v700_v53 = vpack.c.bf16 %v150_v52, %v149_v51  ;;  %v122_v57 = vld [vmem:[#allocation5 + $0x228] sm:$0xff]  ;;  %v140_v59 = vld [vmem:[#allocation5 + $0x2b8] sm:$0xff]  ;;  %v123_v0 = vld [vmem:[#allocation5 + $0x230] sm:$0xff] }
  0x43   :  { %632 = vmatprep.subr.bf16.mxu0 %v631_v26  ;;  %v52_v61 = vld [vmem:[#allocation2 + $0x30] sm:$0xff]  ;;  %v677_v62 = vpack.c.bf16 %v122_v57, %v121_v56  ;;  %v679_v63 = vpack.c.bf16 %v140_v59, %v139_v58  ;;  %v141_v2 = vld [vmem:[#allocation5 + $0x2c0] sm:$0xff]  ;;  %v142_v3 = vld [vmem:[#allocation5 + $0x2c8] sm:$0xff] }
  0x44   :  { %662 = vmatpush3.bf16.msra.mxu1 %v661_v25  ;;  %v124_v1 = vld [vmem:[#allocation5 + $0x238] sm:$0xff]  ;;  %v683_v5 = vpack.c.bf16 %v142_v3, %v141_v2  ;;  %v125_v6 = vld [vmem:[#allocation5 + $0x240] sm:$0xff]  ;;  %v126_v7 = vld [vmem:[#allocation5 + $0x248] sm:$0xff] }
  0x45   :  { %664 = vmatprep.subr.bf16.mxu1 %v663_v30  ;;  %v681_v4 = vpack.c.bf16 %v124_v1, %v123_v0  ;;  %v143_v8 = vld [vmem:[#allocation5 + $0x2d0] sm:$0xff]  ;;  %v144_v9 = vld [vmem:[#allocation5 + $0x2d8] sm:$0xff]  ;;  %v685_v10 = vpack.c.bf16 %v126_v7, %v125_v6  ;;  %v145_v14 = vld [vmem:[#allocation5 + $0x2e0] sm:$0xff] }
  0x46   :  { %634 = vmatpush3.bf16.msra.mxu0 %v633_v34  ;;  %v687_v11 = vpack.c.bf16 %v144_v9, %v143_v8  ;;  %v127_v12 = vld [vmem:[#allocation5 + $0x250] sm:$0xff]  ;;  %v128_v13 = vld [vmem:[#allocation5 + $0x258] sm:$0xff]  ;;  %v146_v15 = vld [vmem:[#allocation5 + $0x2e8] sm:$0xff] }
  0x47   :  { %668 = vmatprep.subr.bf16.mxu0 %v667_v36  ;;  %v689_v16 = vpack.c.bf16 %v128_v13, %v127_v12  ;;  %v691_v17 = vpack.c.bf16 %v146_v15, %v145_v14  ;;  %v129_v18 = vld [vmem:[#allocation5 + $0x260] sm:$0xff]  ;;  %v130_v19 = vld [vmem:[#allocation5 + $0x268] sm:$0xff]  ;;  %v147_v20 = vld [vmem:[#allocation5 + $0x2f0] sm:$0xff] }
  0x48   :  { %666 = vmatpush3.bf16.msra.mxu1 %v665_v35  ;;  %v148_v21 = vld [vmem:[#allocation5 + $0x2f8] sm:$0xff]  ;;  %v693_v22 = vpack.c.bf16 %v130_v19, %v129_v18  ;;  %v131_v24 = vld [vmem:[#allocation5 + $0x270] sm:$0xff]  ;;  %v50_v27 = vld [vmem:[#allocation2 + $0x20] sm:$0xff] }
  0x49   :  { %699 = vmatprep.subr.bf16.mxu1 %v792_v50  ;;  %227 = vmatmul.mubr.f32.vlgmr.msra.gmra.mrb[0].mxu0 %v46_v41  ;;  %v695_v23 = vpack.c.bf16 %v148_v21, %v147_v20  ;;  %v132_v25 = vld [vmem:[#allocation5 + $0x278] sm:$0xff]  ;;  %v486_v30 = vld [vmem:[%s881_s2] ss:$0 sm:$0xff]  ;;  %s796_s2 = smov [#allocation7]  }
  0x4a   :  { %670 = vmatpush3.bf16.msra.mxu0 %v669_v42  ;;  %366 = vmatprep.mubr.f32.mxu0 %v51_v49  ;;  %v697_v26 = vpack.c.bf16 %v132_v25, %v131_v24  ;;  %v454_v49 = vlaneseq  ;;  %s472_s21 = sshll.u32 %s796_s2, 4  ;;  %s473_s21 = int_to_ptr.vmem [resolvable:$true] %s472_s21 }
  0x4b   :  { %297 = vmatmul.mubr.f32.vlgmr.msra.gmra.mrb[0].mxu1 %v48_v43  ;;  %672 = vmatprep.subr.bf16.mxu0 %v671_v45  ;;  %v443_v45 = vld [vmem:[%s882_s3] sm:$0xff]  ;;  %s760_s22 = scalar_lea.vmem %s473_s21, 128  ;;  %p765_p3 = scmp.lt.s32.totalorder %s473_s21, %s473_s21 }
  0x4c   :  { %701 = vmatpush3.bf16.msra.mxu1 %v700_v53  ;;  %600 = vmatprep.mubr.msk.f32.mxu1 %vm793_vm0, %v794_v60  ;;  %v455_v50 = vand.u32 127, %v454_v49  ;;  %p761_p2 = scmp.ne.s32.totalorder %s473_s21, %s760_s22  ;;  %p766_p4 = scmp.lt.s32.totalorder %s760_s22, %s760_s22 }
  0x4e   :  { %674 = vmatpush3.bf16.msra.mxu0 %v673_v54  ;;  %p767_p5 = por %p766_p4, %p765_p3 }
  0x4f   :  { %676 = vmatprep.subr.bf16.mxu0 %v675_v55  ;;  %601 = vmatmul.mubr.msk.f32.vlgmr.msra.gmra.mrb[2].mxu1 %vm158_vm1, %v52_v61 }
  0x50   :  { %p768_p6 = pnand %p767_p5, %p761_p2 }
  0x52   :  { %678 = vmatpush3.bf16.msra.mxu0 %v677_v62 }
  0x53   :  { %680 = vmatprep.subr.bf16.mxu0 %v679_v63 }
  0x56   :  { %682 = vmatpush3.bf16.msra.mxu0 %v681_v4 }
  0x57   :  { %684 = vmatprep.subr.bf16.mxu0 %v683_v5 }
  0x5a   :  { %686 = vmatpush3.bf16.msra.mxu0 %v685_v10 }
  0x5b   :  { %688 = vmatprep.subr.bf16.mxu0 %v687_v11 }
  0x5e   :  { %690 = vmatpush3.bf16.msra.mxu0 %v689_v16 }
  0x5f   :  { %692 = vmatprep.subr.bf16.mxu0 %v691_v17 }
  0x62   :  { %694 = vmatpush3.bf16.msra.mxu0 %v693_v22 }
  0x63   :  { %696 = vmatprep.subr.bf16.mxu0 %v695_v23 }
  0x66   :  { %698 = vmatpush3.bf16.msra.mxu0 %v697_v26 }
  0x69   :  { %367 = vmatmul.mubr.f32.vlgmr.msra.gmra.mrb[2].mxu0 %v50_v27 }
 0x11c   :  { %v520_v29 = vpop.f32.mrb[0].mxu0 }
 0x11d   :  { %v521_v31 = vpop.f32.mrb[1].mxu0 }
 0x11e   :  { %v555_v32 = vpop.f32.mrb[0].mxu1  ;;  %v522_v33 = vadd.f32 %v521_v31, %v520_v29 }
 0x11f   :  { %v556_v34 = vpop.f32.mrb[1].mxu1 }
 0x120   :  { %v557_v35 = vadd.f32 %v556_v34, %v555_v32  ;;  %v229_v36 = vadd.f32 %v522_v33, %v486_v30 }
 0x122   :  { %v299_v37 = vadd.f32 %v557_v35, %v229_v36  ;;  %v438_v38 = vpop.f32.mrb[2].mxu1 }
 0x123   :  { %v602_v39 = vpop.f32.mrb[3].mxu1 }
 0x13c   :  { %v590_v40 = vpop.f32.mrb[2].mxu0 }
 0x13d   :  { %v591_v41 = vpop.f32.mrb[3].mxu0 }
 0x13e   :  { %v592_v42 = vadd.f32 %v591_v41, %v590_v40 }
 0x140   :  { %v369_v43 = vadd.f32 %v592_v42, %v299_v37 }
 0x142   :  { %v439_v44 = vadd.f32 %v438_v38, %v369_v43 }
 0x144   :  { %442 = vst [vmem:[#allocation7] sm:$0xff] %v439_v44  ;;  %444 = vmax.xlane.f32.xlu0 %v439_v44 }
 0x15a   :  { %457 = vperm.xlu0 %711, %v443_v45  }
 0x1d1   :  { %v445_v46 = vpop.xlane.xlu0 %444 }
 0x1d2   :  { %v446_v47 = vsub.f32 %v439_v44, %v445_v46 }
 0x1d4   :  { %v447_v48 = vmul.f32 1.442695, %v446_v47 }
 0x1d6   :  { %712 = vpow2.f32 %v447_v48 }
 0x1d9   :  { %v458_v51 = vpop.permute.xlu0 %457 }
 0x1da   :  { %vm459_vm2 = vcmp.eq.s32.totalorder %v455_v50, %v458_v51 }
 0x1db   :  { %v460_v53 = vsel %vm459_vm2, %v439_v44, 0.0 }
 0x1e0   :  { %v713_v52 = vpop.eup %712 }
 0x1e1   :  { %449 = vadd.xlane.f32.xlu1 %v713_v52 }
 0x1e5   :  { %461 = vadd.xlane.f32.xlu1 %v460_v53 }
 0x1e6   :  { %771 = shalt.err (!%p768_p6)
}
 0x1e7   :  { %s772_s24 = scalar_lea.hbm %s883_s4, 128 }
 0x1e8   :  { %p773_p7 = scmp.ne.s32.totalorder %s883_s4, %s772_s24  ;;  %p776_p8 = scmp.lt.u32.totalorder %s772_s24, %s883_s4 }
 0x1ea   :  { %p778_p9 = pnand %p776_p8, %p773_p7 }
 0x1ec   :  { %781 = shalt.err (!%p778_p9)
}
 0x1ed   :  { %475 = dma.vmem_to_hbm [thread:$0]  %s473_s21, 128, %s883_s4, [#allocation4]   ;;  %vm464_vm3 = vcmask 7168  }
 0x26e   :  { %v450_v54 = vpop.xlane.xlu1 %449 }
 0x26f   :  { %714 = vlog2.f32 %v450_v54 }
 0x272   :  { %v462_v58 = vpop.xlane.xlu1 %461 }
 0x279   :  { %v715_v55 = vpop.eup %714 }
 0x27a   :  { %v452_v56 = vmul.f32 0.6931472, %v715_v55 }
 0x27c   :  { %v453_v57 = vadd.f32 %v452_v56, %v445_v46 }
 0x27e   :  { %v463_v59 = vsub.f32 %v453_v57, %v462_v58 }
 0x280   :  { %465 = vst.msk [vmem:[%s884_s5] sm:$0xff] %vm464_vm3, %v463_v59 }
 0x281   :  { %786 = dma.done.wait [#allocation4], 128  }
 0x282   :  { %787 = vsyncadd [#allocation4], 4294967168 }
 0x283   :  { %483 = vsyncpa [#allocation3], 1 }
 0x284   :  { %484 = vsyncpa [#allocation6], 1 }
 0x285   :  { %485 = vsyncpa [#allocation4], 1 }

</bundles_post_ra>
